<compile_context>
chip_gen: v6e
topology: v6e:2x2x1
jax: 0.10.0
libtpu: 0.0.40
codegen_flags: <defaults>
</compile_context>

<pallas_src>
import functools

import jax
import jax.numpy as jnp
from jax import lax
from jax.experimental import pallas as pl
from jax.experimental.pallas import tpu as pltpu

_LANES = 128
_SUBL = 8            # f32 sublane packing (reductions)
_SUBL_BF16 = 16      # bf16 packs 16 rows / vreg -> keep M tiles 16-aligned
_RED_ROWS = 512      # reduction block rows per grid step

_TM_MAX = 512
_TK_MAX = 8192                    # big K tile: 1 K-step for every layer here
_WBLOCK_BYTES = 8 * 1024 * 1024   # double-buffered weight block budget


def _rup(n, m):
    return ((n + m - 1) // m) * m


# ----------------------------- conv matmul kernels ---------------------------

def _conv_bias_act_1k_kernel(a_ref, w_ref, b_ref, o_ref, *, leaky):
    # Single K-step: dot + bias (+ LeakyReLU 0.2), store in o dtype
    # (bf16 for hidden layers, f32 for the head logits).
    y = jnp.dot(a_ref[...], w_ref[...], preferred_element_type=jnp.float32)
    y = y + b_ref[...]
    if leaky:
        y = jnp.where(y > 0, y, 0.2 * y)
    o_ref[...] = y.astype(o_ref.dtype)


def _conv_bias_act_mk_kernel(a_ref, w_ref, b_ref, o_ref, *, leaky):
    # Multi K-step fallback: accumulate directly into the resident f32 output
    # block (no VMEM scratch), bias/activation epilogue at the last K step.
    k = pl.program_id(2)

    @pl.when(k == 0)
    def _():
        o_ref[...] = jnp.zeros_like(o_ref)

    o_ref[...] += jnp.dot(a_ref[...], w_ref[...],
                          preferred_element_type=jnp.float32)

    @pl.when(k == pl.num_programs(2) - 1)
    def _():
        y = o_ref[...] + b_ref[...]
        if leaky:
            y = jnp.where(y > 0, y, 0.2 * y)
        o_ref[...] = y


def _conv_stats_1k_kernel(a_ref, w_ref, o_ref, sum_ref, sumsq_ref):
    # Conv matmul for BatchNorm layers (single K-step): raw conv output (f32,
    # feeds the normalize pass) + fused per-channel partial sum / sum-of-squares.
    y = jnp.dot(a_ref[...], w_ref[...], preferred_element_type=jnp.float32)
    o_ref[...] = y
    sum_ref[...] = jnp.sum(y, axis=0, keepdims=True)[None]        # (1,1,tn)
    sumsq_ref[...] = jnp.sum(y * y, axis=0, keepdims=True)[None]  # (1,1,tn)


def _conv_stats_mk_kernel(a_ref, w_ref, o_ref, sum_ref, sumsq_ref):
    k = pl.program_id(2)

    @pl.when(k == 0)
    def _():
        o_ref[...] = jnp.zeros_like(o_ref)

    o_ref[...] += jnp.dot(a_ref[...], w_ref[...],
                          preferred_element_type=jnp.float32)

    @pl.when(k == pl.num_programs(2) - 1)
    def _():
        y = o_ref[...]
        sum_ref[...] = jnp.sum(y, axis=0, keepdims=True)[None]
        sumsq_ref[...] = jnp.sum(y * y, axis=0, keepdims=True)[None]


def _scale_shift_lrelu_kernel(x_ref, scale_ref, shift_ref, o_ref):
    # BatchNorm normalize (folded into scale/shift) + LeakyReLU 0.2, bf16 out.
    y = x_ref[...] * scale_ref[...] + shift_ref[...]
    o_ref[...] = jnp.where(y > 0, y, 0.2 * y).astype(o_ref.dtype)


# ------------------------------ reduction kernels ----------------------------

def _sum_sq_diff_kernel(a_ref, b_ref, o_ref):
    @pl.when(pl.program_id(0) == 0)
    def _():
        o_ref[0, 0] = jnp.float32(0.0)

    d = a_ref[...] - b_ref[...]
    o_ref[0, 0] += jnp.sum(d * d)


def _sum_kernel(x_ref, o_ref):
    @pl.when(pl.program_id(0) == 0)
    def _():
        o_ref[0, 0] = jnp.float32(0.0)

    o_ref[0, 0] += jnp.sum(x_ref[...])


def _disc_loss_kernel(r_ref, f_ref, m_ref, hr_ref, hf_ref, sr_ref, sf_ref):
    # Fused discriminator-path reductions (one launch instead of four):
    #   sum(relu(1 - real)), sum(relu(1 + fake)), sum(real), sum(fake)
    # Padded lanes are killed by the 0/1 mask.
    @pl.when(pl.program_id(0) == 0)
    def _():
        hr_ref[0, 0] = jnp.float32(0.0)
        hf_ref[0, 0] = jnp.float32(0.0)
        sr_ref[0, 0] = jnp.float32(0.0)
        sf_ref[0, 0] = jnp.float32(0.0)

    m = m_ref[...]
    r = r_ref[...]
    f = f_ref[...]
    hr_ref[0, 0] += jnp.sum(jnp.maximum(1.0 - r, 0.0) * m)
    hf_ref[0, 0] += jnp.sum(jnp.maximum(1.0 + f, 0.0) * m)
    sr_ref[0, 0] += jnp.sum(r * m)
    sf_ref[0, 0] += jnp.sum(f * m)


# --------------------------- reduction wrappers -------------------------------

def _flatten_pad(x):
    flat = jnp.ravel(x).astype(jnp.float32)
    n = flat.shape[0]
    rows = _rup(max(-(-n // _LANES), 1), _SUBL)
    brows = min(_RED_ROWS, rows)
    rows = _rup(rows, brows)
    total = rows * _LANES
    flat = jnp.pad(flat, (0, total - n))
    return flat.reshape(rows, _LANES), n, brows


def _tiled_reduce(kernel, arrays):
    tiles = []
    brows = None
    for a in arrays:
        t, _, brows = _flatten_pad(a)
        tiles.append(t)
    rows = tiles[0].shape[0]
    out = pl.pallas_call(
        kernel,
        out_shape=jax.ShapeDtypeStruct((1, 1), jnp.float32),
        grid=(rows // brows,),
        in_specs=[pl.BlockSpec((brows, _LANES), lambda i: (i, 0)) for _ in tiles],
        out_specs=pl.BlockSpec(memory_space=pltpu.MemorySpace.SMEM),
        compiler_params=pltpu.CompilerParams(dimension_semantics=("arbitrary",)),
    )(*tiles)
    return out[0, 0], arrays[0].size


def mse_mean(a, b):
    s, n = _tiled_reduce(_sum_sq_diff_kernel, [a, b])
    return s / n


def mean_all(x):
    s, n = _tiled_reduce(_sum_kernel, [x])
    return s / n


def disc_losses(logits_real, logits_fake):
    """Fused hinge D-loss + mean(real) + mean(fake) in one pallas_call."""
    r, n, brows = _flatten_pad(logits_real)
    f, _, _ = _flatten_pad(logits_fake)            # same shape as logits_real
    rows = r.shape[0]
    mask = jnp.pad(jnp.ones((n,), jnp.float32),
                   (0, rows * _LANES - n)).reshape(rows, _LANES)
    outs = pl.pallas_call(
        _disc_loss_kernel,
        out_shape=tuple(jax.ShapeDtypeStruct((1, 1), jnp.float32)
                        for _ in range(4)),
        grid=(rows // brows,),
        in_specs=[pl.BlockSpec((brows, _LANES), lambda i: (i, 0))
                  for _ in range(3)],
        out_specs=tuple(pl.BlockSpec(memory_space=pltpu.MemorySpace.SMEM)
                        for _ in range(4)),
        compiler_params=pltpu.CompilerParams(dimension_semantics=("arbitrary",)),
    )(r, f, mask)
    hinge_r, hinge_f, sum_r, sum_f = (o[0, 0] for o in outs)
    d_loss = 0.5 * (hinge_r / n + hinge_f / n)
    return d_loss, sum_r / n, sum_f / n


# ------------------------------ conv layer ------------------------------------

class ConvLayer:
    """4x4 conv (pad=1) as im2col + tiled MXU matmul with fused epilogue.

    Weight relayout, padding and bf16 cast are done ONCE at init time.
    K tile = full K whenever the (double-buffered) weight block fits the VMEM
    budget, so each layer is a single K-step.  For BatchNorm layers the
    per-channel sum/sumsq accumulation is fused into the conv epilogue; a
    second tiled pass applies scale/shift + LeakyReLU and emits bf16.
    """

    def __init__(self, w_oihw, bias, stride, bn, leaky, out_bf16=True):
        OC, IC, KH, KW = w_oihw.shape
        self.OC, self.IC, self.KH, self.KW = OC, IC, KH, KW
        self.stride = stride
        self.bn = bn            # None or (gamma, beta)
        self.leaky = leaky
        self.out_bf16 = out_bf16

        K = KH * KW * IC
        self.K = K
        Kp0 = _rup(K, 128)
        Np0 = _rup(OC, 128)

        # N tile: <=256, and keep >=2 N-blocks when the channel count allows
        # (v7x megacore parallelism); single 128-wide block otherwise.
        if Np0 <= 128:
            tn = 128
        else:
            tn = min(256, _rup(Np0 // 2, 128))
        self.tn = tn
        self.Np = _rup(Np0, tn)

        # K tile: as large as possible (fewer grid steps); keep the
        # double-buffered bf16 weight block under the VMEM budget.
        tk_cap = max(128, ((_WBLOCK_BYTES // (2 * 2 * tn)) // 128) * 128)
        self.tk = min(_TK_MAX, tk_cap, Kp0)
        self.Kp = _rup(Kp0, self.tk)

        w_mat = jnp.transpose(w_oihw, (2, 3, 1, 0)).reshape(K, OC)
        self.w_p = jnp.pad(
            w_mat, ((0, self.Kp - K), (0, self.Np - OC))).astype(jnp.bfloat16)
        if bias is not None:
            self.b_p = jnp.pad(bias.astype(jnp.float32),
                               (0, self.Np - OC)).reshape(1, self.Np)
        else:
            self.b_p = None
        if bn is not None:
            gamma, beta = bn
            self.gamma_p = jnp.pad(gamma.astype(jnp.float32), (0, self.Np - OC))
            self.beta_p = jnp.pad(beta.astype(jnp.float32), (0, self.Np - OC))

    def _im2col(self, x_nhwc):
        # TODO(synk): im2col still materializes the KH*KW-expanded patch tensor
        # in HBM (bf16); folding the 16 taps into a kernel tap grid axis would
        # remove this duplication entirely.
        B, H, W, C = x_nhwc.shape
        KH, KW, stride, pad = self.KH, self.KW, self.stride, 1
        OH = (H + 2 * pad - KH) // stride + 1
        OW = (W + 2 * pad - KW) // stride + 1
        xp = jnp.pad(x_nhwc.astype(jnp.bfloat16),
                     ((0, 0), (pad, pad), (pad, pad), (0, 0)))
        cols = []
        for i in range(KH):
            for j in range(KW):
                cols.append(xp[:, i:i + (OH - 1) * stride + 1:stride,
                               j:j + (OW - 1) * stride + 1:stride, :])
        patches = jnp.stack(cols, axis=3)                 # [B, OH, OW, KH*KW, C]
        a = patches.reshape(B * OH * OW, KH * KW * C)
        return a, B, OH, OW

    def __call__(self, x_nhwc):
        a, B, OH, OW = self._im2col(x_nhwc)
        M, K = a.shape
        tn, tk, Np, Kp = self.tn, self.tk, self.Np, self.Kp
        gn, gk = Np // tn, Kp // tk

        # M tile: 16-aligned (bf16 sublane packing); if the N axis gives only
        # one block, split M in two so v7x's second TensorCore has work.
        Mp0 = _rup(M, _SUBL_BF16)
        tm = min(_TM_MAX, Mp0)
        if gn == 1 and Mp0 // tm < 2 and Mp0 >= 2 * _SUBL_BF16:
            tm = max(_SUBL_BF16, _rup(Mp0 // 2, _SUBL_BF16))
        Mp = _rup(Mp0, tm)
        gm = Mp // tm

        a_p = jnp.pad(a, ((0, Mp - M), (0, Kp - K)))
        sem = pltpu.CompilerParams(
            dimension_semantics=("parallel", "parallel", "arbitrary"))

        if self.bn is None:
            if gk == 1:
                kern = functools.partial(_conv_bias_act_1k_kernel, leaky=self.leaky)
                out_dtype = jnp.bfloat16 if self.out_bf16 else jnp.float32
            else:
                kern = functools.partial(_conv_bias_act_mk_kernel, leaky=self.leaky)
                out_dtype = jnp.float32     # accumulates in-place in the output
            out = pl.pallas_call(
                kern,
                out_shape=jax.ShapeDtypeStruct((Mp, Np), out_dtype),
                grid=(gm, gn, gk),
                in_specs=[
                    pl.BlockSpec((tm, tk), lambda i, j, k: (i, k)),
                    pl.BlockSpec((tk, tn), lambda i, j, k: (k, j)),
                    pl.BlockSpec((1, tn), lambda i, j, k: (0, j)),
                ],
                out_specs=pl.BlockSpec((tm, tn), lambda i, j, k: (i, j)),
                compiler_params=sem,
            )(a_p, self.w_p, self.b_p)
            y = out[:M, :self.OC]
            return y.reshape(B, OH, OW, self.OC)

        # --- BatchNorm layer: conv (+ fused channel stats) then normalize ---
        kern = _conv_stats_1k_kernel if gk == 1 else _conv_stats_mk_kernel
        out, psum, psumsq = pl.pallas_call(
            kern,
            out_shape=(jax.ShapeDtypeStruct((Mp, Np), jnp.float32),
                       jax.ShapeDtypeStruct((gm, 1, Np), jnp.float32),
                       jax.ShapeDtypeStruct((gm, 1, Np), jnp.float32)),
            grid=(gm, gn, gk),
            in_specs=[
                pl.BlockSpec((tm, tk), lambda i, j, k: (i, k)),
                pl.BlockSpec((tk, tn), lambda i, j, k: (k, j)),
            ],
            out_specs=(
                pl.BlockSpec((tm, tn), lambda i, j, k: (i, j)),
                pl.BlockSpec((1, 1, tn), lambda i, j, k: (i, 0, j)),
                pl.BlockSpec((1, 1, tn), lambda i, j, k: (i, 0, j)),
            ),
            compiler_params=sem,
        )(a_p, self.w_p)

        # tiny per-channel finalize (gm x Np partials -> scale/shift), XLA glue
        csum = jnp.sum(psum, axis=(0, 1))
        csumsq = jnp.sum(psumsq, axis=(0, 1))
        mean = csum / M                              # padded rows are zero
        var = csumsq / M - mean * mean               # biased (train-mode) var
        scale = self.gamma_p * lax.rsqrt(var + 1e-5)
        shift = self.beta_p - mean * scale
        scale = scale.reshape(1, Np)
        shift = shift.reshape(1, Np)

        # normalize + LeakyReLU pass; emit bf16 (next layer's im2col is bf16)
        tmb = Mp // 2 if Mp >= 2 * _SUBL_BF16 else Mp
        gmb = Mp // tmb
        yout = pl.pallas_call(
            _scale_shift_lrelu_kernel,
            out_shape=jax.ShapeDtypeStruct((Mp, Np), jnp.bfloat16),
            grid=(gmb,),
            in_specs=[
                pl.BlockSpec((tmb, Np), lambda i: (i, 0)),
                pl.BlockSpec((1, Np), lambda i: (0, 0)),
                pl.BlockSpec((1, Np), lambda i: (0, 0)),
            ],
            out_specs=pl.BlockSpec((tmb, Np), lambda i: (i, 0)),
            compiler_params=pltpu.CompilerParams(
                dimension_semantics=("parallel",)),
        )(out, scale, shift)
        y = yout[:M, :self.OC]
        return y.reshape(B, OH, OW, self.OC)


# --------------------------- NLayerDiscriminator ------------------------------

class NLayerDiscriminatorPallas:
    """taming-transformers PatchGAN (input_nc=3, ndf=64, n_layers=3)."""

    def __init__(self, key, input_nc=3, ndf=64, n_layers=3):
        chans = [input_nc, ndf]
        for n in range(1, n_layers + 1):
            chans.append(ndf * min(2 ** n, 8))       # [3, 64, 128, 256, 512]
        strides = [2] * n_layers + [1]
        keys = jax.random.split(key, 2 * len(strides) + 1)
        ki = 0
        self.layers = []
        for li, (cin, cout) in enumerate(zip(chans[:-1], chans[1:])):
            w = 0.02 * jax.random.normal(keys[ki], (cout, cin, 4, 4), jnp.float32)
            ki += 1
            if li == 0:
                bias, bn = jnp.zeros((cout,), jnp.float32), None
            else:
                bias = None
                gamma = 1.0 + 0.02 * jax.random.normal(keys[ki], (cout,), jnp.float32)
                ki += 1
                bn = (gamma, jnp.zeros((cout,), jnp.float32))
            self.layers.append(
                ConvLayer(w, bias, strides[li], bn, leaky=True, out_bf16=True))
        w_out = 0.02 * jax.random.normal(keys[ki], (1, chans[-1], 4, 4), jnp.float32)
        self.head = ConvLayer(w_out, jnp.zeros((1,), jnp.float32), 1, None,
                              leaky=False, out_bf16=False)   # f32 logits

    def __call__(self, x_nchw):
        x = jnp.transpose(x_nchw.astype(jnp.float32), (0, 2, 3, 1))  # NCHW->NHWC
        for layer in self.layers:
            x = layer(x)
        x = self.head(x)
        return jnp.transpose(x, (0, 3, 1, 2))                        # (B,1,OH,OW)


# ------------------------------ MSE_LPIPS_GAN ----------------------------------

class MSE_LPIPS_GAN_Pallas:
    def __init__(self, cfg, key):
        self.discriminator = NLayerDiscriminatorPallas(key)
        self.reconstruction_weight = cfg["reconstruction_weight"]
        self.quantizer_weight = cfg["quantizer_weight"]
        self.perceptual_weight = cfg["perceptual_weight"]
        self.lpips_weight = cfg["lpips_weight"]
        self.discriminator_iter_start = cfg["disc_start"]
        self.discriminator_factor = cfg["discriminator_factor"]
        self.discriminator_weight = cfg["discriminator_weight"]
        self.lecam_regularization_weight = 0.0   # matches module (always 0)

    def should_discriminator_be_trained(self, global_step):
        return global_step >= self.discriminator_iter_start

    def forward(self, inputs, reconstructions, x_aux, extra_result_dict,
                global_step, mode="generator"):
        inputs = inputs.astype(jnp.float32)
        reconstructions = reconstructions.astype(jnp.float32)
        if mode == "generator":
            return self._forward_generator(inputs, reconstructions, x_aux,
                                           extra_result_dict, global_step)
        elif mode == "discriminator":
            return self._forward_discriminator(inputs, reconstructions, global_step)
        raise ValueError(f"Unsupported mode {mode}")

    def _forward_generator(self, inputs, reconstructions, x_aux,
                           extra_result_dict, global_step):
        reconstruction_loss = mse_mean(inputs, reconstructions) * self.reconstruction_weight
        if x_aux is not None:
            grid = 16
            aux_gt = jnp.concatenate(
                [inputs[:, :, :grid, :grid], inputs[:, :, :grid, :]], axis=-1)
            reconstruction_loss_aux = mse_mean(aux_gt, x_aux) * self.reconstruction_weight * 10.0
            reconstruction_loss = reconstruction_loss + reconstruction_loss_aux * 17.0 / 256.0

        # TODO(synk): LPIPS() and PerceptualLoss('convnext_s') are external pretrained
        # networks whose architecture/weights are not defined in this module; their
        # contribution is omitted (0.0) instead of being faked.
        perceptual_loss = jnp.float32(0.0)

        generator_loss = jnp.float32(0.0)
        discriminator_factor = (self.discriminator_factor
                                if self.should_discriminator_be_trained(global_step) else 0.0)
        d_weight = 1.0
        if discriminator_factor > 0.0 and self.discriminator_weight > 0.0:
            logits_fake = self.discriminator(reconstructions)
            generator_loss = -mean_all(logits_fake)
        d_weight *= self.discriminator_weight
        quantizer_loss = extra_result_dict["quantizer_loss"]
        return (reconstruction_loss,
                perceptual_loss,
                self.quantizer_weight * quantizer_loss,
                d_weight * discriminator_factor * generator_loss)

    def _forward_discriminator(self, inputs, reconstructions, global_step):
        discriminator_factor = (self.discriminator_factor
                                if self.should_discriminator_be_trained(global_step) else 0.0)
        real_images = lax.stop_gradient(inputs)
        # NOTE: real/fake are intentionally NOT batched into one forward pass:
        # train-mode BatchNorm computes batch statistics per call, so batching
        # would change the reference semantics.
        logits_real = self.discriminator(real_images)
        logits_fake = self.discriminator(lax.stop_gradient(reconstructions))
        hinge_loss, real_mean, fake_mean = disc_losses(
            lax.stop_gradient(logits_real), lax.stop_gradient(logits_fake))
        discriminator_loss = discriminator_factor * hinge_loss
        # lecam_regularization_weight == 0 -> LeCam term / EMA updates are dead code.
        return (discriminator_loss, real_mean, fake_mean)


# ----------------------------------- main --------------------------------------

if __name__ == "__main__":
    key = jax.random.PRNGKey(0)
    k_in, k_rec, k_aux, k_disc = jax.random.split(key, 4)

    B, C, H, W = 2, 3, 32, 32
    inputs = jax.random.uniform(k_in, (B, C, H, W), jnp.float32)
    reconstructions = jax.random.uniform(k_rec, (B, C, H, W), jnp.float32)
    # aux target: cat(inputs[:, :, :16, :16], inputs[:, :, :16, :]) -> (B, C, 16, 16+W)
    x_aux = jax.random.uniform(k_aux, (B, C, 16, 16 + W), jnp.float32)
    extra_result_dict = {"quantizer_loss": jnp.float32(0.37)}

    cfg = dict(reconstruction_weight=1.0, quantizer_weight=1.0,
               perceptual_weight=1.1, lpips_weight=1.0,
               disc_start=0, discriminator_factor=1.0, discriminator_weight=0.1)

    model = MSE_LPIPS_GAN_Pallas(cfg, k_disc)

    gen_out = model.forward(inputs, reconstructions, x_aux, extra_result_dict,
                            global_step=10, mode="generator")
    disc_out = model.forward(inputs, reconstructions, None, extra_result_dict,
                             global_step=10, mode="discriminator")

    jax.block_until_ready((gen_out, disc_out))
    print("KERNEL_OK")
</pallas_src>

<mosaic_0001>
module attributes {stable_mosaic.version = 11 : i64} {
  func.func @_sum_sq_diff_kernel(%arg0: i32, %arg1: memref<48x128xf32, #tpu.memory_space<vmem>>, %arg2: memref<48x128xf32, #tpu.memory_space<vmem>>, %arg3: memref<1x1xf32, #tpu.memory_space<smem>>) attributes {dimension_semantics = [#tpu.dimension_semantics<arbitrary>], iteration_bounds = array<i64: 1>, scalar_prefetch = 0 : i64, scratch_operands = 0 : i64, tpu.core_type = #tpu.core_type<tc>, window_params = [{transform_indices = @transform_0, window_bounds = array<i64: 48, 128>}, {transform_indices = @transform_1, window_bounds = array<i64: 48, 128>}, {transform_indices = @transform_2, window_bounds = array<i64: 1, 1>}]} {
    %c0_i32 = arith.constant 0 : i32
    %0 = arith.cmpi eq, %arg0, %c0_i32 : i32
    %1 = arith.extui %0 : i1 to i32
    %c0_i32_0 = arith.constant 0 : i32
    %2 = arith.cmpi ne, %1, %c0_i32_0 : i32
    scf.if %2 {
      %cst_8 = arith.constant 0.000000e+00 : f32
      %c0_9 = arith.constant 0 : index
      %c0_10 = arith.constant 0 : index
      %14 = memref.load %arg3[%c0_9, %c0_10] : memref<1x1xf32, #tpu.memory_space<smem>>
      memref.store %cst_8, %arg3[%c0_9, %c0_10] : memref<1x1xf32, #tpu.memory_space<smem>>
    } else {
    }
    %c0 = arith.constant 0 : index
    %c0_1 = arith.constant 0 : index
    %3 = vector.load %arg1[%c0, %c0_1] : memref<48x128xf32, #tpu.memory_space<vmem>>, vector<48x128xf32>
    %c0_2 = arith.constant 0 : index
    %c0_3 = arith.constant 0 : index
    %4 = vector.load %arg2[%c0_2, %c0_3] : memref<48x128xf32, #tpu.memory_space<vmem>>, vector<48x128xf32>
    %5 = arith.subf %3, %4 : vector<48x128xf32>
    %c0_4 = arith.constant 0 : index
    %c0_5 = arith.constant 0 : index
    %6 = memref.load %arg3[%c0_4, %c0_5] : memref<1x1xf32, #tpu.memory_space<smem>>
    %7 = arith.mulf %5, %5 : vector<48x128xf32>
    %8 = vector.shape_cast %7 : vector<48x128xf32> to vector<1x48x128xf32>
    %cst = arith.constant dense<0.000000e+00> : vector<1xf32>
    %9 = vector.multi_reduction <add>, %8, %cst [1, 2] : vector<1x48x128xf32> to vector<1xf32>
    %10 = vector.shape_cast %9 : vector<1xf32> to vector<1x1x1xf32>
    %11 = vector.extract %10[0, 0, 0] : f32 from vector<1x1x1xf32>
    %12 = arith.addf %6, %11 : f32
    %c0_6 = arith.constant 0 : index
    %c0_7 = arith.constant 0 : index
    %13 = memref.load %arg3[%c0_6, %c0_7] : memref<1x1xf32, #tpu.memory_space<smem>>
    memref.store %12, %arg3[%c0_6, %c0_7] : memref<1x1xf32, #tpu.memory_space<smem>>
    return
  }
  func.func @transform_0(%arg0: i32) -> (i32, i32) {
    %c0_i32 = arith.constant 0 : i32
    %c0_i32_0 = arith.constant 0 : i32
    return %arg0, %c0_i32 : i32, i32
  }
  func.func @transform_1(%arg0: i32) -> (i32, i32) {
    %c0_i32 = arith.constant 0 : i32
    %c0_i32_0 = arith.constant 0 : i32
    return %arg0, %c0_i32 : i32, i32
  }
  func.func @transform_2(%arg0: i32) -> (i32, i32) {
    %c0_i32 = arith.constant 0 : i32
    %c0_i32_0 = arith.constant 0 : i32
    %c0_i32_1 = arith.constant 0 : i32
    return %c0_i32, %c0_i32_0 : i32, i32
  }
}

</mosaic_0001>

<bundles_post_ra>
// kernel: tpu_custom_call.1
= control target key start
LH: loop header
LB: loop body
LE: loop exit
PB: predicated region body
PF: predicated region fallthrough
CT: control target
= control target key end

     0   :  { %7 = vsyncpa [#allocation3], 0  ;;  %s194_s0 = inlined_call_operand.hbm [shape: f32[48,128], index: 0, kind: input, shape index: {}]   ;;  %s195_s1 = inlined_call_operand.hbm [shape: f32[48,128], index: 1, kind: input, shape index: {}]   ;;  %s196_s2 = inlined_call_operand.hbm [shape: f32[1,1], index: 2, kind: output, shape index: {}]  }
   0x1   :  { %8 = vsyncpa [#allocation6], 0 }
   0x2   :  { %9 = vsyncpa [#allocation4], 0  ;;  %s165_s9 = smov [#allocation2]  }
   0x3   :  { %s15_s10 = sshll.u32 %s165_s9, 4  ;;  %s16_s10 = int_to_ptr.vmem [resolvable:$true] %s15_s10 }
   0x4   :  { %s119_s11 = scalar_lea.vmem %s16_s10, 768  ;;  %p124_p1 = scmp.lt.s32.totalorder %s16_s10, %s16_s10 }
   0x5   :  { %p120_p0 = scmp.ne.s32.totalorder %s16_s10, %s119_s11  ;;  %p125_p2 = scmp.lt.s32.totalorder %s119_s11, %s119_s11 }
   0x7   :  { %p126_p3 = por %p125_p2, %p124_p1 }
   0x9   :  { %p127_p4 = pnand %p126_p3, %p120_p0 }
   0xb   :  { %130 = shalt.err (!%p127_p4)
}
   0xc   :  { %s166_s12 = smov 128   ;;  %s167_s13 = smov 8  }
   0xd   :  { %21 = dma.hbm_to_vmem [thread:$0]  %s194_s0, 768, %s16_s10, [#allocation3], %s166_s12, %s166_s12, %s167_s13  }
   0xe   :  { %s168_s16 = smov [#allocation5]  }
   0xf   :  { %s27_s17 = sshll.u32 %s168_s16, 4  ;;  %s28_s17 = int_to_ptr.vmem [resolvable:$true] %s27_s17 }
  0x10   :  { %s139_s18 = scalar_lea.vmem %s28_s17, 768  ;;  %p144_p6 = scmp.lt.s32.totalorder %s28_s17, %s28_s17 }
  0x11   :  { %p140_p5 = scmp.ne.s32.totalorder %s28_s17, %s139_s18  ;;  %p145_p7 = scmp.lt.s32.totalorder %s139_s18, %s139_s18 }
  0x13   :  { %p146_p8 = por %p145_p7, %p144_p6 }
  0x15   :  { %p147_p9 = pnand %p146_p8, %p140_p5 }
  0x17   :  { %150 = shalt.err (!%p147_p9)
}
  0x18   :  { %33 = dma.hbm_to_vmem [thread:$0]  %s195_s1, 768, %s28_s17, [#allocation6], %s166_s12, %s166_s12, %s167_s13  }
  0x19   :  { %159 = dma.done.wait [#allocation3], 768  }
  0x1a   :  { %160 = vsyncadd [#allocation3], 4294966528 }
  0x1b   :  { %161 = dma.done.wait [#allocation6], 768  }
  0x1c   :  { %162 = vsyncadd [#allocation6], 4294966528  ;;  %v46_v0 = vld [vmem:[#allocation2] sm:$0xff]  ;;  %v47_v1 = vld [vmem:[#allocation2 + $0x8] sm:$0xff]  ;;  %s169_s1 = smov [#allocation7]  }
  0x1d   :  { %v48_v2 = vld [vmem:[#allocation2 + $0x10] sm:$0xff]  ;;  %v49_v3 = vld [vmem:[#allocation2 + $0x18] sm:$0xff]  ;;  %v50_v4 = vld [vmem:[#allocation2 + $0x20] sm:$0xff] }
  0x1e   :  { %v52_v5 = vld [vmem:[#allocation5] sm:$0xff]  ;;  %v53_v6 = vld [vmem:[#allocation5 + $0x8] sm:$0xff]  ;;  %v54_v7 = vld [vmem:[#allocation5 + $0x10] sm:$0xff] }
  0x1f   :  { %v55_v8 = vld [vmem:[#allocation5 + $0x18] sm:$0xff]  ;;  %v56_v9 = vld [vmem:[#allocation5 + $0x20] sm:$0xff]  ;;  %v58_v10 = vsub.f32 %v46_v0, %v52_v5  ;;  %v59_v11 = vsub.f32 %v47_v1, %v53_v6  ;;  %v60_v12 = vsub.f32 %v48_v2, %v54_v7  ;;  %v57_v14 = vld [vmem:[#allocation5 + $0x28] sm:$0xff] }
  0x20   :  { %v51_v13 = vld [vmem:[#allocation2 + $0x28] sm:$0xff]  ;;  %v61_v15 = vsub.f32 %v49_v3, %v55_v8  ;;  %v62_v16 = vsub.f32 %v50_v4, %v56_v9 }
  0x21   :  { %v65_v17 = vmul.f32 %v58_v10, %v58_v10  ;;  %v66_v18 = vmul.f32 %v59_v11, %v59_v11  ;;  %v67_v19 = vmul.f32 %v60_v12, %v60_v12  ;;  %v63_v20 = vsub.f32 %v51_v13, %v57_v14 }
  0x22   :  { %v68_v21 = vmul.f32 %v61_v15, %v61_v15  ;;  %v69_v23 = vmul.f32 %v62_v16, %v62_v16 }
  0x23   :  { %v71_v22 = vadd.f32 %v66_v18, %v65_v17  ;;  %v70_v25 = vmul.f32 %v63_v20, %v63_v20 }
  0x25   :  { %v72_v24 = vadd.f32 %v71_v22, %v67_v19 }
  0x27   :  { %v73_v26 = vadd.f32 %v72_v24, %v68_v21 }
  0x29   :  { %v74_v27 = vadd.f32 %v73_v26, %v69_v23 }
  0x2b   :  { %v75_v28 = vadd.f32 %v74_v27, %v70_v25 }
  0x2d   :  { %76 = vadd.xlane.f32.xlu0 %v75_v28 }
  0xb6   :  { %v77_v29 = vpop.xlane.xlu0 %76 }
  0xb7   :  { %v78_v30 = vrot.slane %v77_v29, 4 }
  0xb9   :  { %v79_v31 = vadd.f32 %v78_v30, %v77_v29 }
  0xbb   :  { %v80_v32 = vrot.slane %v79_v31, 2 }
  0xbd   :  { %v81_v33 = vadd.f32 %v80_v32, %v79_v31 }
  0xbf   :  { %v82_v34 = vrot.slane %v81_v33, 1 }
  0xc1   :  { %v83_v35 = vadd.f32 %v82_v34, %v81_v33 }
  0xc3   :  { %103 = vpush %v83_v35 }
  0xf4   :  { %s104_s0 = spop %103 }
  0xf5   :  { %87 = sst [smem:[#allocation7]] %s104_s0 }
  0xf6   :  { %95 = dma.smem_to_hbm %s169_s1, 16, %s196_s2, [#allocation4]  }
  0xf7   :  { %163 = dma.done.wait [#allocation4], 16  }
  0xf8   :  { %164 = vsyncadd [#allocation4], 4294967280 }
  0xf9   :  { %99 = sfence }
  0xfa   :  { %100 = vsyncpa [#allocation3], 1 }
  0xfb   :  { %101 = vsyncpa [#allocation6], 1 }
  0xfc   :  { %102 = vsyncpa [#allocation4], 1 }

</bundles_post_ra>
